<compile_context>
chip_gen: v5e
topology: v5e:2x2
jax: 0.10.0
libtpu: 0.0.40
codegen_flags: <defaults>
</compile_context>

<pallas_src>
import functools

import jax
import jax.numpy as jnp
from jax.experimental import pallas as pl
from jax.experimental.pallas import tpu as pltpu


def _round_up(x, m):
    return ((x + m - 1) // m) * m


def _mlp_kernel(x_ref, w1_ref, b1_ref, w2_ref, b2_ref, w3_ref, b3_ref, o_ref,
                *, ranged_sigmoid):
    """One batch tile: fused concat-MLP + sigmoid, lane-dense output."""
    tile_b = x_ref.shape[0]
    n_groups = tile_b // 128                       # output rows (128 lanes each)

    # Layer 1: single K=2E bf16 matmul on the MXU, f32 accumulation.
    h1 = jnp.dot(x_ref[...], w1_ref[...], preferred_element_type=jnp.float32)
    h1 = jnp.maximum(h1 + b1_ref[...], 0.0)                       # ReLU (f32)

    # Layer 2: native bf16 MXU matmul (avoids f32-emulation passes).
    h2 = jnp.dot(h1.astype(jnp.bfloat16), w2_ref[...],
                 preferred_element_type=jnp.float32)
    h2 = jnp.maximum(h2 + b2_ref[...], 0.0)                       # ReLU (f32)

    # Layer 3: single output column -> VPU multiply + lane reduction
    # (keeps the 32->1 projection off the MXU).
    logit_col = jnp.sum(h2 * w3_ref[...], axis=-1, keepdims=True)  # (tile_b, 1)

    # Relayout the per-row scalars from a sublane-major column to lane-dense
    # rows: for each group of 128 rows, broadcast the column across lanes,
    # mask with the 128x128 identity and reduce over sublanes.  This turns
    # tile_b masked 1-lane stores into n_groups row stores.
    r_idx = jax.lax.broadcasted_iota(jnp.int32, (128, 128), 0)
    c_idx = jax.lax.broadcasted_iota(jnp.int32, (128, 128), 1)
    eye = (r_idx == c_idx).astype(jnp.float32)                     # (128, 128)

    for g in range(n_groups):                                      # static loop
        col_g = logit_col[g * 128:(g + 1) * 128, :]                # (128, 1)
        row = jnp.sum(col_g * eye, axis=0, keepdims=True)          # (1, 128)
        out_row = jax.nn.sigmoid(row + b3_ref[...])
        if ranged_sigmoid:                                         # fused epilogue
            out_row = out_row * 3.0 + 1.0
        o_ref[g:g + 1, :] = out_row


def recommender_forward(x_ids, params, *, ranged_sigmoid=False, tile_b=4096):
    """x_ids: (B, 2) int32 [user_id, item_id]. Returns (B,) float32 scores."""
    user_tbl, item_tbl, w1, b1, w2, b2, w3, b3 = params
    E = user_tbl.shape[1]
    H1 = w1.shape[1]
    H2 = w2.shape[1]
    B = x_ids.shape[0]
    d_in = 2 * E

    # Batch tiling: tile_b must be a multiple of 128 (lane-dense output groups).
    tile_b = _round_up(max(128, tile_b), 128)
    tile_b = min(tile_b, _round_up(B, 128))
    if B > 128:
        # Keep grid >= 2 when the batch allows so v7x's two TensorCores both
        # get work ("parallel" grid axis); no-op on v5e/v6e (1 TC per chip).
        tile_b = min(tile_b, _round_up((B + 1) // 2, 128))
    tile_b = max(tile_b, 128)
    Bp = _round_up(B, tile_b)
    grid = (Bp // tile_b,)

    # Pad ids to the tile boundary.  Padded rows reuse id 0 (a valid index);
    # they are computed and sliced away below -- do NOT "fix" this into an
    # out-of-bounds index.
    uid = jnp.pad(x_ids[:, 0], (0, Bp - B))
    iid = jnp.pad(x_ids[:, 1], (0, Bp - B))

    # Embedding gather kept in XLA (data-dependent); concat fused with the
    # gather/cast by XLA and fed to the kernel as one bf16 [Bp, 2E] slab so the
    # kernel's layer 1 is a single K=2E matmul.
    # TODO(synk): fuse the embedding gather into the kernel (scalar-prefetched
    # ids + VMEM-resident tables for small vocabs, DMA gather for large ones)
    # to remove the HBM round-trip of the gathered activations.
    u_emb = jnp.take(user_tbl, uid, axis=0)
    i_emb = jnp.take(item_tbl, iid, axis=0)
    x_emb = jnp.concatenate([u_emb, i_emb], axis=1).astype(jnp.bfloat16)

    w1_bf = w1.astype(jnp.bfloat16)                                # [2E, H1]
    w2_bf = w2.astype(jnp.bfloat16)                                # [H1, H2]
    w3_row = w3.reshape(1, H2)                                     # [1, H2] (f32)

    def const_spec(shape):
        return pl.BlockSpec(shape, lambda i: (0, 0))               # resident

    out = pl.pallas_call(
        functools.partial(_mlp_kernel, ranged_sigmoid=ranged_sigmoid),
        out_shape=jax.ShapeDtypeStruct((Bp // 128, 128), jnp.float32),
        grid=grid,
        in_specs=[
            pl.BlockSpec((tile_b, d_in), lambda i: (i, 0)),        # embeddings
            const_spec((d_in, H1)),       # W1 (bf16)
            const_spec((1, H1)),          # b1 (f32)
            const_spec((H1, H2)),         # W2 (bf16)
            const_spec((1, H2)),          # b2 (f32)
            const_spec((1, H2)),          # w3 row (f32)
            const_spec((1, 1)),           # b3 (f32)
        ],
        out_specs=pl.BlockSpec((tile_b // 128, 128), lambda i: (i, 0)),
        compiler_params=pltpu.CompilerParams(
            dimension_semantics=("parallel",)),
    )(x_emb, w1_bf, b1, w2_bf, b2, w3_row, b3)

    # (Bp//128, 128) row-major == batch order -> flatten and drop padding.
    return out.reshape(-1)[:B]                                     # view(-1)


def init_params(key, num_users, num_items, embed_dim):
    """Deterministic synthetic parameters matching the nn.Module shapes."""
    ks = jax.random.split(key, 8)
    d_in = 2 * embed_dim

    def unif(k, shape, bound):
        return jax.random.uniform(k, shape, jnp.float32, -bound, bound)

    user_tbl = jax.random.normal(ks[0], (num_users, embed_dim), jnp.float32)
    item_tbl = jax.random.normal(ks[1], (num_items, embed_dim), jnp.float32)
    # Linear weights stored (in_features, out_features) for x @ W.
    w1 = unif(ks[2], (d_in, 256), 1.0 / jnp.sqrt(d_in))
    b1 = unif(ks[3], (1, 256), 1.0 / jnp.sqrt(d_in))
    w2 = unif(ks[4], (256, 32), 1.0 / jnp.sqrt(256))
    b2 = unif(ks[5], (1, 32), 1.0 / jnp.sqrt(256))
    w3 = unif(ks[6], (32, 1), 1.0 / jnp.sqrt(32))
    b3 = unif(ks[7], (1, 1), 1.0 / jnp.sqrt(32))
    return (user_tbl, item_tbl, w1, b1, w2, b2, w3, b3)


def reference_forward(x_ids, params, *, ranged_sigmoid=False):
    """Pure-JAX f32 reference of the PyTorch forward pass."""
    user_tbl, item_tbl, w1, b1, w2, b2, w3, b3 = params
    u = jnp.take(user_tbl, x_ids[:, 0], axis=0)
    i = jnp.take(item_tbl, x_ids[:, 1], axis=0)
    h = jnp.concatenate([u, i], axis=1)
    h = jnp.maximum(h @ w1 + b1, 0.0)
    h = jnp.maximum(h @ w2 + b2, 0.0)
    s = jax.nn.sigmoid(h @ w3 + b3).reshape(-1)
    if ranged_sigmoid:
        s = s * 3.0 + 1.0
    return s


if __name__ == "__main__":
    num_users, num_items, embed_dim = 16, 24, 32

    key = jax.random.PRNGKey(0)
    k_params, k_u, k_i = jax.random.split(key, 3)
    params = init_params(k_params, num_users, num_items, embed_dim)

    # Run 1: small batch, single tile, plain sigmoid.
    batch = 8
    user_ids = jax.random.randint(k_u, (batch,), 0, num_users, jnp.int32)
    item_ids = jax.random.randint(k_i, (batch,), 0, num_items, jnp.int32)
    x = jnp.stack([user_ids, item_ids], axis=1)                    # (B, 2) int32

    out = jax.block_until_ready(recommender_forward(x, params))
    ref = reference_forward(x, params)
    assert out.shape == (batch,)
    # bf16 layers 1-2 -> relaxed tolerance vs the f32 reference (intentional).
    assert jnp.allclose(out, ref, atol=3e-2, rtol=3e-2), (out, ref)

    # Run 2: grid > 1 (multiple batch tiles), batch padding, fused *3+1 epilogue.
    batch2 = 300
    k_u2, k_i2 = jax.random.split(jax.random.PRNGKey(1))
    x2 = jnp.stack(
        [jax.random.randint(k_u2, (batch2,), 0, num_users, jnp.int32),
         jax.random.randint(k_i2, (batch2,), 0, num_items, jnp.int32)], axis=1)
    out2 = jax.block_until_ready(
        recommender_forward(x2, params, ranged_sigmoid=True, tile_b=128))
    ref2 = reference_forward(x2, params, ranged_sigmoid=True)
    assert out2.shape == (batch2,)
    assert jnp.allclose(out2, ref2, atol=6e-2, rtol=3e-2), (out2, ref2)

    print("KERNEL_OK")
</pallas_src>

<mosaic_0001>
module attributes {stable_mosaic.version = 11 : i64} {
  func.func @_mlp_kernel(%arg0: i32, %arg1: memref<128x64xbf16, #tpu.memory_space<vmem>>, %arg2: memref<64x256xbf16, #tpu.memory_space<vmem>>, %arg3: memref<1x256xf32, #tpu.memory_space<vmem>>, %arg4: memref<256x32xbf16, #tpu.memory_space<vmem>>, %arg5: memref<1x32xf32, #tpu.memory_space<vmem>>, %arg6: memref<1x32xf32, #tpu.memory_space<vmem>>, %arg7: memref<1x1xf32, #tpu.memory_space<vmem>>, %arg8: memref<1x128xf32, #tpu.memory_space<vmem>>) attributes {dimension_semantics = [#tpu.dimension_semantics<parallel>], iteration_bounds = array<i64: 1>, scalar_prefetch = 0 : i64, scratch_operands = 0 : i64, tpu.core_type = #tpu.core_type<tc>, window_params = [{transform_indices = @transform_0, window_bounds = array<i64: 128, 64>}, {pipeline_mode = #tpu.pipeline_mode<synchronous>, transform_indices = @transform_1, window_bounds = array<i64: 64, 256>}, {pipeline_mode = #tpu.pipeline_mode<synchronous>, transform_indices = @transform_2, window_bounds = array<i64: 1, 256>}, {pipeline_mode = #tpu.pipeline_mode<synchronous>, transform_indices = @transform_3, window_bounds = array<i64: 256, 32>}, {pipeline_mode = #tpu.pipeline_mode<synchronous>, transform_indices = @transform_4, window_bounds = array<i64: 1, 32>}, {pipeline_mode = #tpu.pipeline_mode<synchronous>, transform_indices = @transform_5, window_bounds = array<i64: 1, 32>}, {pipeline_mode = #tpu.pipeline_mode<synchronous>, transform_indices = @transform_6, window_bounds = array<i64: 1, 1>}, {transform_indices = @transform_7, window_bounds = array<i64: 1, 128>}]} {
    %c0 = arith.constant 0 : index
    %c0_0 = arith.constant 0 : index
    %0 = vector.load %arg1[%c0, %c0_0] : memref<128x64xbf16, #tpu.memory_space<vmem>>, vector<128x64xbf16>
    %c0_1 = arith.constant 0 : index
    %c0_2 = arith.constant 0 : index
    %1 = vector.load %arg2[%c0_1, %c0_2] : memref<64x256xbf16, #tpu.memory_space<vmem>>, vector<64x256xbf16>
    %cst = arith.constant dense<0.000000e+00> : vector<128x256xf32>
    %2 = tpu.matmul %0, %1, %cst {dimension_numbers = #tpu.dot_dimension_numbers<[1], [0], [0], [1], [0, 0, 1, 1], [], []>} : vector<128x64xbf16>, vector<64x256xbf16>, vector<128x256xf32> -> vector<128x256xf32>
    %c0_3 = arith.constant 0 : index
    %c0_4 = arith.constant 0 : index
    %3 = vector.load %arg3[%c0_3, %c0_4] : memref<1x256xf32, #tpu.memory_space<vmem>>, vector<1x256xf32>
    %4 = vector.broadcast %3 : vector<1x256xf32> to vector<128x256xf32>
    %5 = arith.addf %2, %4 : vector<128x256xf32>
    %cst_5 = arith.constant 0.000000e+00 : f32
    %6 = vector.broadcast %cst_5 : f32 to vector<128x256xf32>
    %7 = arith.maximumf %5, %6 : vector<128x256xf32>
    %8 = arith.truncf %7 : vector<128x256xf32> to vector<128x256xbf16>
    %c0_6 = arith.constant 0 : index
    %c0_7 = arith.constant 0 : index
    %9 = vector.load %arg4[%c0_6, %c0_7] : memref<256x32xbf16, #tpu.memory_space<vmem>>, vector<256x32xbf16>
    %cst_8 = arith.constant dense<0.000000e+00> : vector<128x32xf32>
    %10 = tpu.matmul %8, %9, %cst_8 {dimension_numbers = #tpu.dot_dimension_numbers<[1], [0], [0], [1], [0, 0, 1, 1], [], []>} : vector<128x256xbf16>, vector<256x32xbf16>, vector<128x32xf32> -> vector<128x32xf32>
    %c0_9 = arith.constant 0 : index
    %c0_10 = arith.constant 0 : index
    %11 = vector.load %arg5[%c0_9, %c0_10] : memref<1x32xf32, #tpu.memory_space<vmem>>, vector<1x32xf32>
    %12 = vector.broadcast %11 : vector<1x32xf32> to vector<128x32xf32>
    %13 = arith.addf %10, %12 : vector<128x32xf32>
    %cst_11 = arith.constant 0.000000e+00 : f32
    %14 = vector.broadcast %cst_11 : f32 to vector<128x32xf32>
    %15 = arith.maximumf %13, %14 : vector<128x32xf32>
    %c0_12 = arith.constant 0 : index
    %c0_13 = arith.constant 0 : index
    %16 = vector.load %arg6[%c0_12, %c0_13] : memref<1x32xf32, #tpu.memory_space<vmem>>, vector<1x32xf32>
    %17 = vector.broadcast %16 : vector<1x32xf32> to vector<128x32xf32>
    %18 = arith.mulf %15, %17 : vector<128x32xf32>
    %cst_14 = arith.constant dense<0.000000e+00> : vector<128xf32>
    %19 = vector.multi_reduction <add>, %18, %cst_14 [1] : vector<128x32xf32> to vector<128xf32>
    %20 = vector.shape_cast %19 : vector<128xf32> to vector<128x1xf32>
    %21 = tpu.iota {dimensions = array<i32: 0>} : vector<128x128xi32>
    %22 = tpu.iota {dimensions = array<i32: 1>} : vector<128x128xi32>
    %23 = arith.cmpi eq, %21, %22 : vector<128x128xi32>
    %24 = arith.extui %23 : vector<128x128xi1> to vector<128x128xi32>
    %25 = arith.sitofp %24 : vector<128x128xi32> to vector<128x128xf32>
    %26 = vector.broadcast %20 : vector<128x1xf32> to vector<128x128xf32>
    %27 = arith.mulf %26, %25 : vector<128x128xf32>
    %cst_15 = arith.constant dense<0.000000e+00> : vector<128xf32>
    %28 = vector.multi_reduction <add>, %27, %cst_15 [0] : vector<128x128xf32> to vector<128xf32>
    %29 = vector.shape_cast %28 : vector<128xf32> to vector<1x128xf32>
    %c0_16 = arith.constant 0 : index
    %c0_17 = arith.constant 0 : index
    %30 = vector.load %arg7[%c0_16, %c0_17] : memref<1x1xf32, #tpu.memory_space<vmem>>, vector<1x1xf32>
    %31 = vector.broadcast %30 : vector<1x1xf32> to vector<1x128xf32>
    %32 = arith.addf %29, %31 : vector<1x128xf32>
    %33 = arith.negf %32 : vector<1x128xf32>
    %34 = math.exp %33 : vector<1x128xf32>
    %cst_18 = arith.constant 1.000000e+00 : f32
    %35 = vector.broadcast %cst_18 : f32 to vector<1x128xf32>
    %36 = arith.addf %35, %34 : vector<1x128xf32>
    %37 = arith.divf %35, %36 : vector<1x128xf32>
    %c0_19 = arith.constant 0 : index
    %c0_20 = arith.constant 0 : index
    %38 = vector.load %arg8[%c0_19, %c0_20] : memref<1x128xf32, #tpu.memory_space<vmem>>, vector<1x128xf32>
    tpu.vector_store %arg8[%c0_19, %c0_20], %37 {strides = array<i32>} : memref<1x128xf32, #tpu.memory_space<vmem>>, vector<1x128xf32>,
    return
  }
  func.func @transform_0(%arg0: i32) -> (i32, i32) {
    %c0_i32 = arith.constant 0 : i32
    %c0_i32_0 = arith.constant 0 : i32
    return %arg0, %c0_i32 : i32, i32
  }
  func.func @transform_1(%arg0: i32) -> (i32, i32) {
    %c0_i32 = arith.constant 0 : i32
    %c0_i32_0 = arith.constant 0 : i32
    %c0_i32_1 = arith.constant 0 : i32
    return %c0_i32, %c0_i32_0 : i32, i32
  }
  func.func @transform_2(%arg0: i32) -> (i32, i32) {
    %c0_i32 = arith.constant 0 : i32
    %c0_i32_0 = arith.constant 0 : i32
    %c0_i32_1 = arith.constant 0 : i32
    return %c0_i32, %c0_i32_0 : i32, i32
  }
  func.func @transform_3(%arg0: i32) -> (i32, i32) {
    %c0_i32 = arith.constant 0 : i32
    %c0_i32_0 = arith.constant 0 : i32
    %c0_i32_1 = arith.constant 0 : i32
    return %c0_i32, %c0_i32_0 : i32, i32
  }
  func.func @transform_4(%arg0: i32) -> (i32, i32) {
    %c0_i32 = arith.constant 0 : i32
    %c0_i32_0 = arith.constant 0 : i32
    %c0_i32_1 = arith.constant 0 : i32
    return %c0_i32, %c0_i32_0 : i32, i32
  }
  func.func @transform_5(%arg0: i32) -> (i32, i32) {
    %c0_i32 = arith.constant 0 : i32
    %c0_i32_0 = arith.constant 0 : i32
    %c0_i32_1 = arith.constant 0 : i32
    return %c0_i32, %c0_i32_0 : i32, i32
  }
  func.func @transform_6(%arg0: i32) -> (i32, i32) {
    %c0_i32 = arith.constant 0 : i32
    %c0_i32_0 = arith.constant 0 : i32
    %c0_i32_1 = arith.constant 0 : i32
    return %c0_i32, %c0_i32_0 : i32, i32
  }
  func.func @transform_7(%arg0: i32) -> (i32, i32) {
    %c0_i32 = arith.constant 0 : i32
    %c0_i32_0 = arith.constant 0 : i32
    return %arg0, %c0_i32 : i32, i32
  }
}

</mosaic_0001>

<bundles_post_ra>
// kernel: tpu_custom_call.1
= control target key start
LH: loop header
LB: loop body
LE: loop exit
PB: predicated region body
PF: predicated region fallthrough
CT: control target
= control target key end

     0   :  { %s1338_s0 = inlined_call_operand.vmem [shape: bf16[128,64], index: 0, kind: input, shape index: {}]   ;;  %s1339_s1 = inlined_call_operand.vmem [shape: bf16[64,256], index: 1, kind: input, shape index: {}]   ;;  %s1340_s2 = inlined_call_operand.vmem [shape: f32[1,256], index: 2, kind: input, shape index: {}]   ;;  %s1341_s3 = inlined_call_operand.vmem [shape: bf16[256,32], index: 3, kind: input, shape index: {}]   ;;  %s1342_s4 = inlined_call_operand.vmem [shape: f32[1,32], index: 4, kind: input, shape index: {}]   ;;  %s1343_s5 = inlined_call_operand.vmem [shape: f32[1,32], index: 5, kind: input, shape index: {}]   ;;  %s1344_s6 = inlined_call_operand.<no memory space> [shape: f32[1,1], index: 6, kind: input, shape index: {}]   ;;  %s1345_s7 = inlined_call_operand.hbm [shape: f32[1,128], index: 7, kind: output, shape index: {}]  }
   0x1   :  { %v12_v0 = vstv %s1344_s6 }
   0x2   :  { %13 = vst [vmem:[#allocation2] sm:$0x1] %v12_v0 }
   0x3   :  { %v832_v1 = vld [vmem:[%s1339_s1 + $0x30] sm:$0xf]  ;;  %v950_v2 = vld [vmem:[%s1339_s1 + $0x34] sm:$0xf0]  ;;  %v949_v3 = vld [vmem:[%s1339_s1 + $0x34] sm:$0xf] }
   0x4   :  { %v833_v4 = vor.u32 %v950_v2, %v832_v1  ;;  %v834_v5 = vld [vmem:[%s1339_s1 + $0x38] sm:$0xf0]  ;;  %v824_v6 = vld [vmem:[%s1339_s1 + $0x20] sm:$0xf]  ;;  %v948_v7 = vld [vmem:[%s1339_s1 + $0x24] sm:$0xf0] }
   0x5   :  { %v837_v8 = vor.u32 %v949_v3, %v834_v5  ;;  %v947_v9 = vld [vmem:[%s1339_s1 + $0x24] sm:$0xf]  ;;  %v826_v10 = vld [vmem:[%s1339_s1 + $0x28] sm:$0xf0]  ;;  %v825_v11 = vor.u32 %v948_v7, %v824_v6  ;;  %v816_v13 = vld [vmem:[%s1339_s1 + $0x10] sm:$0xf] }
   0x6   :  { %169 = vmatpush.bf16.msra.mxu0 %v833_v4  ;;  %v829_v12 = vor.u32 %v947_v9, %v826_v10  ;;  %v946_v14 = vld [vmem:[%s1339_s1 + $0x14] sm:$0xf0]  ;;  %v945_v15 = vld [vmem:[%s1339_s1 + $0x14] sm:$0xf]  ;;  %v818_v16 = vld [vmem:[%s1339_s1 + $0x18] sm:$0xf0] }
   0x7   :  { %218 = vmatpush.bf16.msra.mxu1 %v837_v8  ;;  %v817_v17 = vor.u32 %v946_v14, %v816_v13 }
   0xa   :  { %170 = vmatpush.bf16.msra.mxu0 %v825_v11 }
   0xb   :  { %14 = vsyncpa [#allocation4], 0  ;;  %219 = vmatpush.bf16.msra.mxu1 %v829_v12  ;;  %v821_v18 = vor.u32 %v945_v15, %v818_v16  ;;  %v808_v19 = vld [vmem:[%s1339_s1] sm:$0xf]  ;;  %v944_v20 = vld [vmem:[%s1339_s1 + $0x4] sm:$0xf0] }
   0xc   :  { %v943_v21 = vld [vmem:[%s1339_s1 + $0x4] sm:$0xf]  ;;  %v810_v22 = vld [vmem:[%s1339_s1 + $0x8] sm:$0xf0]  ;;  %v809_v23 = vor.u32 %v944_v20, %v808_v19  ;;  %vm140_vm0 = vcmask 523264   ;;  %v937_v27 = vld [vmem:[%s1338_s0 + $0x10] sm:$0xff] }
   0xd   :  { %v813_v24 = vor.u32 %v943_v21, %v810_v22  ;;  %v935_v25 = vld [vmem:[%s1338_s0] sm:$0xff]  ;;  %v936_v26 = vld [vmem:[%s1338_s0 + $0x8] sm:$0xff]  ;;  %v938_v28 = vld [vmem:[%s1338_s0 + $0x18] sm:$0xff]  ;;  %vm577_vm1 = vcmask 261120   ;;  %s765_s13 = sshll.u32 %s1345_s7, 4  ;;  %s766_s13 = int_to_ptr.hbm [resolvable:$true] %s765_s13 }
   0xe   :  { %171 = vmatpush.bf16.msra.mxu0 %v817_v17  ;;  %v939_v29 = vld [vmem:[%s1338_s0 + $0x20] sm:$0xff]  ;;  %v958_v30 = vld [vmem:[%s1341_s3 + $0x38] sm:$0xff]  ;;  %v940_v32 = vld [vmem:[%s1338_s0 + $0x28] sm:$0xff] }
   0xf   :  { %220 = vmatpush.bf16.msra.mxu1 %v821_v18  ;;  %v966_v31 = vld [vmem:[%s1341_s3 + $0x78] sm:$0xff]  ;;  %443 = vmatpush.bf16.msra.mxu2 %v958_v30  ;;  %v957_v33 = vld [vmem:[%s1341_s3 + $0x30] sm:$0xff]  ;;  %v956_v35 = vld [vmem:[%s1341_s3 + $0x28] sm:$0xff] }
  0x10   :  { %492 = vmatpush.bf16.msra.mxu3 %v966_v31  ;;  %v965_v34 = vld [vmem:[%s1341_s3 + $0x70] sm:$0xff]  ;;  %v964_v36 = vld [vmem:[%s1341_s3 + $0x68] sm:$0xff]  ;;  %v955_v37 = vld [vmem:[%s1341_s3 + $0x20] sm:$0xff] }
  0x11   :  { %v963_v38 = vld [vmem:[%s1341_s3 + $0x60] sm:$0xff]  ;;  %v941_v39 = vld [vmem:[%s1338_s0 + $0x30] sm:$0xff]  ;;  %v954_v40 = vld [vmem:[%s1341_s3 + $0x18] sm:$0xff] }
  0x12   :  { %172 = vmatpush.bf16.msra.mxu0 %v809_v23  ;;  %v962_v41 = vld [vmem:[%s1341_s3 + $0x58] sm:$0xff]  ;;  %v953_v42 = vld [vmem:[%s1341_s3 + $0x10] sm:$0xff]  ;;  %v952_v44 = vld [vmem:[%s1341_s3 + $0x8] sm:$0xff] }
  0x13   :  { %221 = vmatpush.bf16.msra.mxu1 %v813_v24  ;;  %444 = vmatpush.bf16.msra.mxu2 %v957_v33  ;;  %v961_v43 = vld [vmem:[%s1341_s3 + $0x50] sm:$0xff]  ;;  %v960_v45 = vld [vmem:[%s1341_s3 + $0x48] sm:$0xff]  ;;  %v951_v46 = vld [vmem:[%s1341_s3] sm:$0xff] }
  0x14   :  { %493 = vmatpush.bf16.msra.mxu3 %v965_v34  ;;  %v959_v47 = vld [vmem:[%s1341_s3 + $0x40] sm:$0xff]  ;;  %v942_v48 = vld [vmem:[%s1338_s0 + $0x38] sm:$0xff] }
  0x15   :  { %838 = vmatmul.msk.bf16.vlgmr.msra.gmra.mxu0 %vm140_vm0, %v935_v25  ;;  %v54_v49 = vld [vmem:[%s1340_s2] sm:$0x3] }
  0x16   :  { %846 = vmatmul.msk.bf16.vlgmr.msra.gmra.mxu1 %vm140_vm0, %v935_v25  ;;  %v1189_v52 = vperm.slane %v54_v49, 0  ;;  %v1191_v53 = vperm.slane %v54_v49, 1 }
  0x17   :  { %445 = vmatpush.bf16.msra.mxu2 %v956_v35 }
  0x18   :  { %494 = vmatpush.bf16.msra.mxu3 %v964_v36 }
  0x1b   :  { %446 = vmatpush.bf16.msra.mxu2 %v955_v37 }
  0x1c   :  { %495 = vmatpush.bf16.msra.mxu3 %v963_v38 }
  0x1f   :  { %447 = vmatpush.bf16.msra.mxu2 %v954_v40 }
  0x20   :  { %496 = vmatpush.bf16.msra.mxu3 %v962_v41 }
  0x23   :  { %448 = vmatpush.bf16.msra.mxu2 %v953_v42 }
  0x24   :  { %497 = vmatpush.bf16.msra.mxu3 %v961_v43 }
  0x25   :  { %839 = vmatmul.msk.bf16.gmra.mxu0 %vm140_vm0, %v936_v26 }
  0x26   :  { %847 = vmatmul.msk.bf16.gmra.mxu1 %vm140_vm0, %v936_v26 }
  0x27   :  { %449 = vmatpush.bf16.msra.mxu2 %v952_v44 }
  0x28   :  { %498 = vmatpush.bf16.msra.mxu3 %v960_v45 }
  0x2b   :  { %450 = vmatpush.bf16.msra.mxu2 %v951_v46 }
  0x2c   :  { %499 = vmatpush.bf16.msra.mxu3 %v959_v47 }
  0x35   :  { %840 = vmatmul.msk.bf16.gmra.mxu0 %vm140_vm0, %v937_v27 }
  0x36   :  { %848 = vmatmul.msk.bf16.gmra.mxu1 %vm140_vm0, %v937_v27 }
  0x45   :  { %841 = vmatmul.msk.bf16.gmra.mxu0 %vm140_vm0, %v938_v28 }
  0x46   :  { %849 = vmatmul.msk.bf16.gmra.mxu1 %vm140_vm0, %v938_v28 }
  0x55   :  { %842 = vmatmul.msk.bf16.gmra.mxu0 %vm140_vm0, %v939_v29 }
  0x56   :  { %850 = vmatmul.msk.bf16.gmra.mxu1 %vm140_vm0, %v939_v29 }
  0x65   :  { %843 = vmatmul.msk.bf16.gmra.mxu0 %vm140_vm0, %v940_v32 }
  0x66   :  { %851 = vmatmul.msk.bf16.gmra.mxu1 %vm140_vm0, %v940_v32 }
  0x75   :  { %844 = vmatmul.msk.bf16.gmra.mxu0 %vm140_vm0, %v941_v39 }
  0x76   :  { %852 = vmatmul.msk.bf16.gmra.mxu1 %vm140_vm0, %v941_v39 }
  0x85   :  { %845 = vmatmul.msk.bf16.gmra.mxu0 %vm140_vm0, %v942_v48 }
  0x86   :  { %853 = vmatmul.msk.bf16.gmra.mxu1 %vm140_vm0, %v942_v48 }
  0x92   :  { %v174_v50 = vpop.f32.mrf.mxu0 }
  0x93   :  { %v223_v51 = vpop.f32.mrf.mxu1  ;;  %v175_v54 = vadd.f32 %v174_v50, %v1189_v52 }
  0x94   :  { %v224_v55 = vadd.f32 %v223_v51, %v1191_v53 }
  0x95   :  { %v263_v60 = vmax.f32 %v175_v54, 0.0 }
  0x96   :  { %v264_v62 = vmax.f32 %v224_v55, 0.0 }
  0x9a   :  { %v176_v56 = vpop.f32.mrf.mxu0 }
  0x9b   :  { %v177_v57 = vadd.f32 %v176_v56, %v1189_v52  ;;  %v225_v58 = vpop.f32.mrf.mxu1 }
  0x9c   :  { %v226_v59 = vadd.f32 %v225_v58, %v1191_v53 }
  0x9d   :  { %v265_v61 = vmax.f32 %v177_v57, 0.0 }
  0x9e   :  { %v266_v63 = vmax.f32 %v226_v59, 0.0 }
  0x9f   :  { %v295_v0 = vpack.c.bf16 %v265_v61, %v263_v60 }
  0xa0   :  { %v296_v1 = vpack.c.bf16 %v266_v63, %v264_v62 }
  0xa1   :  { %451 = vmatmul.bf16.vlgmr.msra.gmra.mxu2 %v295_v0 }
  0xa2   :  { %500 = vmatmul.bf16.vlgmr.msra.gmra.mxu3 %v296_v1  ;;  %v179_v2 = vpop.f32.mrf.mxu0 }
  0xa3   :  { %v228_v3 = vpop.f32.mrf.mxu1  ;;  %v180_v4 = vadd.f32 %v179_v2, %v1189_v52 }
  0xa4   :  { %v229_v5 = vadd.f32 %v228_v3, %v1191_v53 }
  0xa5   :  { %v267_v10 = vmax.f32 %v180_v4, 0.0 }
  0xa6   :  { %v268_v12 = vmax.f32 %v229_v5, 0.0 }
  0xaa   :  { %v181_v6 = vpop.f32.mrf.mxu0 }
  0xab   :  { %v182_v7 = vadd.f32 %v181_v6, %v1189_v52  ;;  %v230_v8 = vpop.f32.mrf.mxu1 }
  0xac   :  { %v231_v9 = vadd.f32 %v230_v8, %v1191_v53 }
  0xad   :  { %v269_v11 = vmax.f32 %v182_v7, 0.0 }
  0xae   :  { %v270_v13 = vmax.f32 %v231_v9, 0.0 }
  0xaf   :  { %v297_v14 = vpack.c.bf16 %v269_v11, %v267_v10 }
  0xb0   :  { %v298_v15 = vpack.c.bf16 %v270_v13, %v268_v12 }
  0xb1   :  { %456 = vmatmul.bf16.gmra.mxu2 %v297_v14 }
  0xb2   :  { %505 = vmatmul.bf16.gmra.mxu3 %v298_v15  ;;  %v184_v16 = vpop.f32.mrf.mxu0 }
  0xb3   :  { %v233_v17 = vpop.f32.mrf.mxu1  ;;  %v185_v18 = vadd.f32 %v184_v16, %v1189_v52 }
  0xb4   :  { %v234_v19 = vadd.f32 %v233_v17, %v1191_v53 }
  0xb5   :  { %v271_v24 = vmax.f32 %v185_v18, 0.0 }
  0xb6   :  { %v272_v26 = vmax.f32 %v234_v19, 0.0 }
  0xba   :  { %v186_v20 = vpop.f32.mrf.mxu0 }
  0xbb   :  { %v187_v21 = vadd.f32 %v186_v20, %v1189_v52  ;;  %v235_v22 = vpop.f32.mrf.mxu1 }
  0xbc   :  { %v236_v23 = vadd.f32 %v235_v22, %v1191_v53 }
  0xbd   :  { %v273_v25 = vmax.f32 %v187_v21, 0.0 }
  0xbe   :  { %v274_v27 = vmax.f32 %v236_v23, 0.0 }
  0xbf   :  { %v299_v28 = vpack.c.bf16 %v273_v25, %v271_v24 }
  0xc0   :  { %v300_v29 = vpack.c.bf16 %v274_v27, %v272_v26 }
  0xc1   :  { %461 = vmatmul.bf16.gmra.mxu2 %v299_v28 }
  0xc2   :  { %510 = vmatmul.bf16.gmra.mxu3 %v300_v29  ;;  %v189_v30 = vpop.f32.mrf.mxu0 }
  0xc3   :  { %v238_v31 = vpop.f32.mrf.mxu1  ;;  %v190_v32 = vadd.f32 %v189_v30, %v1189_v52 }
  0xc4   :  { %v239_v33 = vadd.f32 %v238_v31, %v1191_v53 }
  0xc5   :  { %v275_v38 = vmax.f32 %v190_v32, 0.0 }
  0xc6   :  { %v276_v40 = vmax.f32 %v239_v33, 0.0 }
  0xca   :  { %v191_v34 = vpop.f32.mrf.mxu0 }
  0xcb   :  { %v192_v35 = vadd.f32 %v191_v34, %v1189_v52  ;;  %v240_v36 = vpop.f32.mrf.mxu1 }
  0xcc   :  { %v241_v37 = vadd.f32 %v240_v36, %v1191_v53 }
  0xcd   :  { %v277_v39 = vmax.f32 %v192_v35, 0.0 }
  0xce   :  { %v278_v41 = vmax.f32 %v241_v37, 0.0 }
  0xcf   :  { %v301_v42 = vpack.c.bf16 %v277_v39, %v275_v38  ;;  %v1228_v38 = vld [vmem:[%s1342_s4] ss:$0 sm:$0xff]  ;;  %s1006_s4 = smov [#allocation3]  }
  0xd0   :  { %v302_v43 = vpack.c.bf16 %v278_v41, %v276_v40 }
  0xd1   :  { %466 = vmatmul.bf16.gmra.mxu2 %v301_v42 }
  0xd2   :  { %515 = vmatmul.bf16.gmra.mxu3 %v302_v43  ;;  %v194_v44 = vpop.f32.mrf.mxu0 }
  0xd3   :  { %v243_v45 = vpop.f32.mrf.mxu1  ;;  %v195_v46 = vadd.f32 %v194_v44, %v1189_v52 }
  0xd4   :  { %v244_v47 = vadd.f32 %v243_v45, %v1191_v53 }
  0xd5   :  { %v279_v54 = vmax.f32 %v195_v46, 0.0 }
  0xd6   :  { %v280_v56 = vmax.f32 %v244_v47, 0.0 }
  0xda   :  { %v196_v48 = vpop.f32.mrf.mxu0 }
  0xdb   :  { %v197_v49 = vadd.f32 %v196_v48, %v1189_v52  ;;  %v245_v50 = vpop.f32.mrf.mxu1 }
  0xdc   :  { %v246_v51 = vadd.f32 %v245_v50, %v1191_v53 }
  0xdd   :  { %v281_v55 = vmax.f32 %v197_v49, 0.0 }
  0xde   :  { %v282_v57 = vmax.f32 %v246_v51, 0.0 }
  0xdf   :  { %v303_v58 = vpack.c.bf16 %v281_v55, %v279_v54 }
  0xe0   :  { %v304_v59 = vpack.c.bf16 %v282_v57, %v280_v56 }
  0xe1   :  { %471 = vmatmul.bf16.gmra.mxu2 %v303_v58 }
  0xe2   :  { %520 = vmatmul.bf16.gmra.mxu3 %v304_v59  ;;  %v199_v60 = vpop.f32.mrf.mxu0 }
  0xe3   :  { %v248_v61 = vpop.f32.mrf.mxu1  ;;  %v200_v62 = vadd.f32 %v199_v60, %v1189_v52 }
  0xe4   :  { %v249_v63 = vadd.f32 %v248_v61, %v1191_v53 }
  0xe5   :  { %v283_v4 = vmax.f32 %v200_v62, 0.0 }
  0xe6   :  { %v284_v6 = vmax.f32 %v249_v63, 0.0 }
  0xea   :  { %v201_v0 = vpop.f32.mrf.mxu0 }
  0xeb   :  { %v202_v1 = vadd.f32 %v201_v0, %v1189_v52  ;;  %v250_v2 = vpop.f32.mrf.mxu1 }
  0xec   :  { %v251_v3 = vadd.f32 %v250_v2, %v1191_v53 }
  0xed   :  { %v285_v5 = vmax.f32 %v202_v1, 0.0 }
  0xee   :  { %v286_v7 = vmax.f32 %v251_v3, 0.0 }
  0xef   :  { %v305_v8 = vpack.c.bf16 %v285_v5, %v283_v4 }
  0xf0   :  { %v306_v9 = vpack.c.bf16 %v286_v7, %v284_v6 }
  0xf1   :  { %476 = vmatmul.bf16.gmra.mxu2 %v305_v8 }
  0xf2   :  { %525 = vmatmul.bf16.gmra.mxu3 %v306_v9  ;;  %v204_v10 = vpop.f32.mrf.mxu0 }
  0xf3   :  { %v253_v11 = vpop.f32.mrf.mxu1  ;;  %v205_v12 = vadd.f32 %v204_v10, %v1189_v52 }
  0xf4   :  { %v254_v13 = vadd.f32 %v253_v11, %v1191_v53 }
  0xf5   :  { %v287_v18 = vmax.f32 %v205_v12, 0.0 }
  0xf6   :  { %v288_v20 = vmax.f32 %v254_v13, 0.0 }
  0xfa   :  { %v206_v14 = vpop.f32.mrf.mxu0 }
  0xfb   :  { %v207_v15 = vadd.f32 %v206_v14, %v1189_v52  ;;  %v255_v16 = vpop.f32.mrf.mxu1 }
  0xfc   :  { %v256_v17 = vadd.f32 %v255_v16, %v1191_v53 }
  0xfd   :  { %v289_v19 = vmax.f32 %v207_v15, 0.0 }
  0xfe   :  { %v290_v21 = vmax.f32 %v256_v17, 0.0 }
  0xff   :  { %v307_v22 = vpack.c.bf16 %v289_v19, %v287_v18 }
 0x100   :  { %v308_v23 = vpack.c.bf16 %v290_v21, %v288_v20 }
 0x101   :  { %481 = vmatmul.bf16.gmra.mxu2 %v307_v22 }
 0x102   :  { %530 = vmatmul.bf16.gmra.mxu3 %v308_v23  ;;  %v209_v24 = vpop.f32.mrf.mxu0 }
 0x103   :  { %v258_v25 = vpop.f32.mrf.mxu1  ;;  %v210_v26 = vadd.f32 %v209_v24, %v1189_v52 }
 0x104   :  { %v259_v27 = vadd.f32 %v258_v25, %v1191_v53 }
 0x105   :  { %v291_v32 = vmax.f32 %v210_v26, 0.0 }
 0x106   :  { %v292_v34 = vmax.f32 %v259_v27, 0.0 }
 0x10a   :  { %v211_v28 = vpop.f32.mrf.mxu0 }
 0x10b   :  { %v212_v29 = vadd.f32 %v211_v28, %v1189_v52  ;;  %v260_v30 = vpop.f32.mrf.mxu1 }
 0x10c   :  { %v261_v31 = vadd.f32 %v260_v30, %v1191_v53  ;;  %v1234_v53 = vld [vmem:[%s1343_s5] ss:$0 sm:$0xff]  ;;  %s763_s5 = sshll.u32 %s1006_s4, 4  ;;  %s764_s5 = int_to_ptr.vmem [resolvable:$true] %s763_s5 }
 0x10d   :  { %v293_v33 = vmax.f32 %v212_v29, 0.0 }
 0x10e   :  { %v294_v35 = vmax.f32 %v261_v31, 0.0 }
 0x10f   :  { %v309_v36 = vpack.c.bf16 %v293_v33, %v291_v32 }
 0x110   :  { %v310_v37 = vpack.c.bf16 %v294_v35, %v292_v34 }
 0x111   :  { %486 = vmatmul.bf16.gmra.mxu2 %v309_v36 }
 0x112   :  { %535 = vmatmul.bf16.gmra.mxu3 %v310_v37 }
 0x124   :  { %v452_v39 = vpop.f32.mrf.mxu2 }
 0x125   :  { %v453_v40 = vadd.f32 %v1228_v38, %v452_v39  ;;  %v501_v52 = vpop.f32.mrf.mxu3 }
 0x127   :  { %v502_v41 = vadd.f32 %v501_v52, %v453_v40 }
 0x129   :  { %v541_v42 = vmax.f32 %v502_v41, 0.0 }
 0x12b   :  { %v561_v43 = vmul.f32 %v1234_v53, %v541_v42 }
 0x12c   :  { %v454_v44 = vpop.f32.mrf.mxu2 }
 0x12d   :  { %v455_v45 = vadd.f32 %v1228_v38, %v454_v44  ;;  %v503_v46 = vpop.f32.mrf.mxu3  ;;  %v578_v47 = vsel %vm577_vm1, %v561_v43, 0.0 }
 0x12e   :  { %579 = vadd.xlane.f32.xlu0 %v578_v47 }
 0x12f   :  { %v504_v48 = vadd.f32 %v503_v46, %v455_v45 }
 0x131   :  { %v542_v49 = vmax.f32 %v504_v48, 0.0 }
 0x133   :  { %v562_v50 = vmul.f32 %v1234_v53, %v542_v49 }
 0x134   :  { %v457_v51 = vpop.f32.mrf.mxu2 }
 0x135   :  { %v458_v54 = vadd.f32 %v1228_v38, %v457_v51  ;;  %v506_v55 = vpop.f32.mrf.mxu3  ;;  %v581_v56 = vsel %vm577_vm1, %v562_v50, 0.0 }
 0x136   :  { %582 = vadd.xlane.f32.xlu0 %v581_v56 }
 0x137   :  { %v507_v57 = vadd.f32 %v506_v55, %v458_v54 }
 0x139   :  { %v543_v58 = vmax.f32 %v507_v57, 0.0 }
 0x13b   :  { %v563_v59 = vmul.f32 %v1234_v53, %v543_v58 }
 0x13c   :  { %v459_v60 = vpop.f32.mrf.mxu2 }
 0x13d   :  { %v460_v61 = vadd.f32 %v1228_v38, %v459_v60  ;;  %v508_v62 = vpop.f32.mrf.mxu3  ;;  %v584_v63 = vsel %vm577_vm1, %v563_v59, 0.0 }
 0x13e   :  { %585 = vadd.xlane.f32.xlu1 %v584_v63 }
 0x13f   :  { %v509_v0 = vadd.f32 %v508_v62, %v460_v61 }
 0x141   :  { %v544_v1 = vmax.f32 %v509_v0, 0.0 }
 0x143   :  { %v564_v2 = vmul.f32 %v1234_v53, %v544_v1 }
 0x144   :  { %v462_v3 = vpop.f32.mrf.mxu2 }
 0x145   :  { %v463_v4 = vadd.f32 %v1228_v38, %v462_v3  ;;  %v511_v5 = vpop.f32.mrf.mxu3  ;;  %v587_v6 = vsel %vm577_vm1, %v564_v2, 0.0 }
 0x146   :  { %588 = vadd.xlane.f32.xlu1 %v587_v6 }
 0x147   :  { %v512_v7 = vadd.f32 %v511_v5, %v463_v4 }
 0x149   :  { %v545_v8 = vmax.f32 %v512_v7, 0.0 }
 0x14b   :  { %v565_v9 = vmul.f32 %v1234_v53, %v545_v8 }
 0x14c   :  { %v464_v10 = vpop.f32.mrf.mxu2 }
 0x14d   :  { %v465_v11 = vadd.f32 %v1228_v38, %v464_v10  ;;  %v513_v12 = vpop.f32.mrf.mxu3  ;;  %v590_v13 = vsel %vm577_vm1, %v565_v9, 0.0 }
 0x14e   :  { %591 = vadd.xlane.f32.xlu2 %v590_v13 }
 0x14f   :  { %v514_v14 = vadd.f32 %v513_v12, %v465_v11 }
 0x151   :  { %v546_v15 = vmax.f32 %v514_v14, 0.0 }
 0x153   :  { %v566_v16 = vmul.f32 %v1234_v53, %v546_v15  ;;  %v1004_v15 = vmov 0  }
 0x154   :  { %v467_v17 = vpop.f32.mrf.mxu2  ;;  %970 = vset.pattern.permute.xlu1 %v1004_v15  ;;  %971 = vset.pattern.permute.xlu0 %v1004_v15 }
 0x155   :  { %v468_v18 = vadd.f32 %v1228_v38, %v467_v17  ;;  %v516_v19 = vpop.f32.mrf.mxu3  ;;  %v593_v20 = vsel %vm577_vm1, %v566_v16, 0.0 }
 0x156   :  { %594 = vadd.xlane.f32.xlu2 %v593_v20 }
 0x157   :  { %v517_v21 = vadd.f32 %v516_v19, %v468_v18 }
 0x159   :  { %v547_v22 = vmax.f32 %v517_v21, 0.0 }
 0x15b   :  { %v567_v23 = vmul.f32 %v1234_v53, %v547_v22 }
 0x15c   :  { %v469_v24 = vpop.f32.mrf.mxu2 }
 0x15d   :  { %v470_v25 = vadd.f32 %v1228_v38, %v469_v24  ;;  %v518_v26 = vpop.f32.mrf.mxu3  ;;  %v596_v27 = vsel %vm577_vm1, %v567_v23, 0.0 }
 0x15e   :  { %597 = vadd.xlane.f32.xlu0 %v596_v27  ;;  %v730_v27 = vld [vmem:[#allocation2] sm:$0x1] }
 0x15f   :  { %v519_v28 = vadd.f32 %v518_v26, %v470_v25 }
 0x161   :  { %v548_v29 = vmax.f32 %v519_v28, 0.0  ;;  %v626_v28 = vlaneseq }
 0x163   :  { %v568_v30 = vmul.f32 %v1234_v53, %v548_v29 }
 0x164   :  { %v472_v31 = vpop.f32.mrf.mxu2 }
 0x165   :  { %v473_v32 = vadd.f32 %v1228_v38, %v472_v31  ;;  %v521_v33 = vpop.f32.mrf.mxu3  ;;  %v599_v34 = vsel %vm577_vm1, %v568_v30, 0.0  ;;  %v1283_v31 = vshrl.u32 %v626_v28, 7 }
 0x166   :  { %600 = vadd.xlane.f32.xlu1 %v599_v34 }
 0x167   :  { %v522_v35 = vadd.f32 %v521_v33, %v473_v32  ;;  %v1286_v33 = vand.u32 127, %v626_v28  ;;  %v629_v34 = vadd.s32 16, %v1283_v31 }
 0x169   :  { %v549_v36 = vmax.f32 %v522_v35, 0.0  ;;  %vm645_vm3 = vcmp.eq.s32.totalorder %v1283_v31, %v1286_v33  ;;  %vm647_vm4 = vcmp.eq.s32.totalorder %v629_v34, %v1286_v33 }
 0x16b   :  { %v569_v37 = vmul.f32 %v1234_v53, %v549_v36  ;;  %v631_v36 = vadd.s32 32, %v1283_v31 }
 0x16c   :  { %v474_v39 = vpop.f32.mrf.mxu2 }
 0x16d   :  { %v475_v40 = vadd.f32 %v1228_v38, %v474_v39  ;;  %v523_v52 = vpop.f32.mrf.mxu3  ;;  %v602_v41 = vsel %vm577_vm1, %v569_v37, 0.0  ;;  %v1005_v37 = vmov 0.0   ;;  %vm649_vm6 = vcmp.eq.s32.totalorder %v631_v36, %v1286_v33 }
 0x16e   :  { %603 = vadd.xlane.f32.xlu2 %v602_v41  ;;  %v918_v41 = vsel %vm645_vm3, 1.0, %v1005_v37 }
 0x16f   :  { %v524_v42 = vadd.f32 %v523_v52, %v475_v40  ;;  %v632_v52 = vadd.s32 40, %v1283_v31 }
 0x171   :  { %v550_v43 = vmax.f32 %v524_v42, 0.0  ;;  %v920_v42 = vsel %vm647_vm4, 1.0, %v1005_v37  ;;  %vm650_vm7 = vcmp.eq.s32.totalorder %v632_v52, %v1286_v33 }
 0x173   :  { %v570_v44 = vmul.f32 %v1234_v53, %v550_v43 }
 0x174   :  { %v477_v45 = vpop.f32.mrf.mxu2 }
 0x175   :  { %v478_v46 = vadd.f32 %v1228_v38, %v477_v45  ;;  %v526_v47 = vpop.f32.mrf.mxu3  ;;  %v605_v48 = vsel %vm577_vm1, %v570_v44, 0.0  ;;  %v633_v45 = vadd.s32 48, %v1283_v31 }
 0x176   :  { %606 = vadd.xlane.f32.xlu0 %v605_v48 }
 0x177   :  { %v527_v49 = vadd.f32 %v526_v47, %v478_v46  ;;  %vm651_vm8 = vcmp.eq.s32.totalorder %v633_v45, %v1286_v33 }
 0x179   :  { %v551_v50 = vmax.f32 %v527_v49, 0.0  ;;  %v634_v49 = vadd.s32 56, %v1283_v31 }
 0x17b   :  { %v571_v51 = vmul.f32 %v1234_v53, %v551_v50  ;;  %v922_v50 = vsel %vm649_vm6, 1.0, %v1005_v37  ;;  %vm652_vm9 = vcmp.eq.s32.totalorder %v634_v49, %v1286_v33 }
 0x17c   :  { %v479_v54 = vpop.f32.mrf.mxu2 }
 0x17d   :  { %v480_v55 = vadd.f32 %v1228_v38, %v479_v54  ;;  %v528_v56 = vpop.f32.mrf.mxu3  ;;  %v608_v57 = vsel %vm577_vm1, %v571_v51, 0.0 }
 0x17e   :  { %609 = vadd.xlane.f32.xlu1 %v608_v57  ;;  %v923_v57 = vsel %vm650_vm7, 1.0, %v1005_v37 }
 0x17f   :  { %v529_v58 = vadd.f32 %v528_v56, %v480_v55  ;;  %v635_v56 = vadd.s32 64, %v1283_v31 }
 0x181   :  { %v552_v59 = vmax.f32 %v529_v58, 0.0  ;;  %vm653_vm10 = vcmp.eq.s32.totalorder %v635_v56, %v1286_v33 }
 0x183   :  { %v572_v60 = vmul.f32 %v1234_v53, %v552_v59 }
 0x184   :  { %v482_v61 = vpop.f32.mrf.mxu2 }
 0x185   :  { %v483_v62 = vadd.f32 %v1228_v38, %v482_v61  ;;  %v531_v63 = vpop.f32.mrf.mxu3  ;;  %v611_v0 = vsel %vm577_vm1, %v572_v60, 0.0  ;;  %v636_v61 = vadd.s32 72, %v1283_v31 }
 0x186   :  { %612 = vadd.xlane.f32.xlu2 %v611_v0 }
 0x187   :  { %v532_v1 = vadd.f32 %v531_v63, %v483_v62  ;;  %v924_v62 = vsel %vm651_vm8, 1.0, %v1005_v37  ;;  %vm654_vm11 = vcmp.eq.s32.totalorder %v636_v61, %v1286_v33 }
 0x189   :  { %v553_v2 = vmax.f32 %v532_v1, 0.0 }
 0x18b   :  { %v573_v3 = vmul.f32 %v1234_v53, %v553_v2  ;;  %v637_v2 = vadd.s32 80, %v1283_v31 }
 0x18c   :  { %v484_v4 = vpop.f32.mrf.mxu2 }
 0x18d   :  { %v485_v5 = vadd.f32 %v1228_v38, %v484_v4  ;;  %v533_v6 = vpop.f32.mrf.mxu3  ;;  %v614_v7 = vsel %vm577_vm1, %v573_v3, 0.0  ;;  %v925_v3 = vsel %vm652_vm9, 1.0, %v1005_v37  ;;  %vm655_vm12 = vcmp.eq.s32.totalorder %v637_v2, %v1286_v33 }
 0x18e   :  { %615 = vadd.xlane.f32.xlu0 %v614_v7  ;;  %v926_v7 = vsel %vm653_vm10, 1.0, %v1005_v37 }
 0x18f   :  { %v534_v8 = vadd.f32 %v533_v6, %v485_v5  ;;  %v638_v6 = vadd.s32 88, %v1283_v31 }
 0x191   :  { %v554_v9 = vmax.f32 %v534_v8, 0.0  ;;  %vm656_vm13 = vcmp.eq.s32.totalorder %v638_v6, %v1286_v33 }
 0x193   :  { %v574_v10 = vmul.f32 %v1234_v53, %v554_v9 }
 0x194   :  { %v487_v11 = vpop.f32.mrf.mxu2 }
 0x195   :  { %v488_v12 = vadd.f32 %v1228_v38, %v487_v11  ;;  %v536_v13 = vpop.f32.mrf.mxu3  ;;  %v617_v14 = vsel %vm577_vm1, %v574_v10, 0.0  ;;  %v639_v11 = vadd.s32 96, %v1283_v31 }
 0x196   :  { %618 = vadd.xlane.f32.xlu1 %v617_v14 }
 0x197   :  { %v537_v16 = vadd.f32 %v536_v13, %v488_v12  ;;  %v927_v12 = vsel %vm654_vm11, 1.0, %v1005_v37  ;;  %vm657_vm14 = vcmp.eq.s32.totalorder %v639_v11, %v1286_v33 }
 0x199   :  { %v555_v17 = vmax.f32 %v537_v16, 0.0  ;;  %v640_v16 = vadd.s32 104, %v1283_v31 }
 0x19b   :  { %v575_v18 = vmul.f32 %v1234_v53, %v555_v17  ;;  %v928_v17 = vsel %vm655_vm12, 1.0, %v1005_v37  ;;  %vm658_vm15 = vcmp.eq.s32.totalorder %v640_v16, %v1286_v33 }
 0x19c   :  { %v489_v19 = vpop.f32.mrf.mxu2 }
 0x19d   :  { %v490_v20 = vadd.f32 %v1228_v38, %v489_v19  ;;  %v620_v21 = vsel %vm577_vm1, %v575_v18, 0.0  ;;  %v538_v22 = vpop.f32.mrf.mxu3  ;;  %v628_v38 = vadd.s32 8, %v1283_v31 }
 0x19e   :  { %621 = vadd.xlane.f32.xlu2 %v620_v21  ;;  %v641_v21 = vadd.s32 112, %v1283_v31 }
 0x19f   :  { %v539_v23 = vadd.f32 %v538_v22, %v490_v20  ;;  %vm646_vm2 = vcmp.eq.s32.totalorder %v628_v38, %v1286_v33  ;;  %v929_v22 = vsel %vm656_vm13, 1.0, %v1005_v37 }
 0x1a0   :  { %v919_v39 = vsel %vm646_vm2, 1.0, %v1005_v37  ;;  %vm659_vm0 = vcmp.eq.s32.totalorder %v641_v21, %v1286_v33 }
 0x1a1   :  { %v556_v24 = vmax.f32 %v539_v23, 0.0  ;;  %v580_v29 = vpop.xlane.xlu0 %579 }
 0x1a2   :  { %v693_v47 = vmul.f32 %v918_v41, %v580_v29  ;;  %v642_v29 = vadd.s32 120, %v1283_v31 }
 0x1a3   :  { %v576_v25 = vmul.f32 %v1234_v53, %v556_v24  ;;  %v630_v53 = vadd.s32 24, %v1283_v31 }
 0x1a5   :  { %v623_v26 = vsel %vm577_vm1, %v576_v25, 0.0  ;;  %vm648_vm5 = vcmp.eq.s32.totalorder %v630_v53, %v1286_v33  ;;  %v930_v25 = vsel %vm657_vm14, 1.0, %v1005_v37  ;;  %v932_v53 = vsel %vm659_vm0, 1.0, %v1005_v37 }
 0x1a6   :  { %624 = vadd.xlane.f32.xlu0 %v623_v26  ;;  %v921_v46 = vsel %vm648_vm5, 1.0, %v1005_v37  ;;  %vm660_vm1 = vcmp.eq.s32.totalorder %v642_v29, %v1286_v33 }
 0x1a7   :  { %v933_v41 = vsel %vm660_vm1, 1.0, %v1005_v37 }
 0x1a9   :  { %v583_v35 = vpop.xlane.xlu0 %582 }
 0x1aa   :  { %v694_v44 = vmul.f32 %v919_v39, %v583_v35 }
 0x1ac   :  { %v709_v54 = vadd.f32 %v694_v44, %v693_v47 }
 0x1af   :  { %733 = vperm.xlu1 %970, %v730_v27  }
 0x1b1   :  { %v586_v30 = vpop.xlane.xlu1 %585 }
 0x1b2   :  { %v695_v48 = vmul.f32 %v920_v42, %v586_v30  ;;  %v931_v30 = vsel %vm658_vm15, 1.0, %v1005_v37 }
 0x1b4   :  { %v710_v59 = vadd.f32 %v709_v54, %v695_v48 }
 0x1b9   :  { %v589_v40 = vpop.xlane.xlu1 %588 }
 0x1ba   :  { %v696_v55 = vmul.f32 %v921_v46, %v589_v40 }
 0x1bc   :  { %v711_v0 = vadd.f32 %v710_v59, %v696_v55 }
 0x1c1   :  { %v592_v32 = vpop.xlane.xlu2 %591 }
 0x1c2   :  { %v697_v60 = vmul.f32 %v922_v50, %v592_v32 }
 0x1c4   :  { %v712_v4 = vadd.f32 %v711_v0, %v697_v60 }
 0x1c9   :  { %v595_v43 = vpop.xlane.xlu2 %594 }
 0x1ca   :  { %v698_v1 = vmul.f32 %v923_v57, %v595_v43 }
 0x1cc   :  { %v713_v9 = vadd.f32 %v712_v4, %v698_v1 }
 0x1d1   :  { %v598_v51 = vpop.xlane.xlu0 %597 }
 0x1d2   :  { %v699_v5 = vmul.f32 %v924_v62, %v598_v51 }
 0x1d4   :  { %v714_v14 = vadd.f32 %v713_v9, %v699_v5 }
 0x1d9   :  { %v601_v58 = vpop.xlane.xlu1 %600 }
 0x1da   :  { %v700_v10 = vmul.f32 %v925_v3, %v601_v58 }
 0x1dc   :  { %v715_v19 = vadd.f32 %v714_v14, %v700_v10 }
 0x1e1   :  { %v604_v63 = vpop.xlane.xlu2 %603 }
 0x1e2   :  { %v701_v15 = vmul.f32 %v926_v7, %v604_v63 }
 0x1e4   :  { %v716_v23 = vadd.f32 %v715_v19, %v701_v15 }
 0x1e9   :  { %v607_v8 = vpop.xlane.xlu0 %606 }
 0x1ea   :  { %v702_v20 = vmul.f32 %v927_v12, %v607_v8 }
 0x1ec   :  { %v717_v27 = vadd.f32 %v716_v23, %v702_v20 }
 0x1f1   :  { %v610_v13 = vpop.xlane.xlu1 %609 }
 0x1f2   :  { %v703_v24 = vmul.f32 %v928_v17, %v610_v13 }
 0x1f4   :  { %v718_v38 = vadd.f32 %v717_v27, %v703_v24 }
 0x1f9   :  { %v613_v18 = vpop.xlane.xlu2 %612 }
 0x1fa   :  { %v704_v28 = vmul.f32 %v929_v22, %v613_v18 }
 0x1fc   :  { %v719_v36 = vadd.f32 %v718_v38, %v704_v28 }
 0x201   :  { %v616_v26 = vpop.xlane.xlu0 %615 }
 0x202   :  { %v705_v34 = vmul.f32 %v930_v25, %v616_v26 }
 0x204   :  { %v720_v40 = vadd.f32 %v719_v36, %v705_v34 }
 0x209   :  { %v619_v32 = vpop.xlane.xlu1 %618 }
 0x20a   :  { %v706_v39 = vmul.f32 %v931_v30, %v619_v32 }
 0x20c   :  { %v721_v42 = vadd.f32 %v720_v40, %v706_v39 }
 0x211   :  { %v622_v35 = vpop.xlane.xlu2 %621 }
 0x212   :  { %v707_v52 = vmul.f32 %v932_v53, %v622_v35 }
 0x214   :  { %v722_v44 = vadd.f32 %v721_v42, %v707_v52 }
 0x219   :  { %v625_v43 = vpop.xlane.xlu0 %624 }
 0x21a   :  { %v708_v31 = vmul.f32 %v933_v41, %v625_v43 }
 0x21c   :  { %v723_v45 = vadd.f32 %v722_v44, %v708_v31 }
 0x21e   :  { %v724_v46 = vrot.slane %v723_v45, 4 }
 0x220   :  { %v725_v47 = vadd.f32 %v724_v46, %v723_v45 }
 0x221   :  { %v734_v49 = vpop.permute.xlu1 %733 }
 0x222   :  { %v726_v48 = vrot.slane %v725_v47, 2  ;;  %v736_v54 = vperm.slane %v734_v49, 0 }
 0x224   :  { %v727_v50 = vadd.f32 %v726_v48, %v725_v47 }
 0x226   :  { %v728_v51 = vrot.slane %v727_v50, 1 }
 0x228   :  { %v729_v55 = vadd.f32 %v728_v51, %v727_v50 }
 0x22a   :  { %v737_v56 = vadd.f32 %v736_v54, %v729_v55 }
 0x22c   :  { %v934_v57 = vmul.f32 -1.442695, %v737_v56 }
 0x22e   :  { %974 = vpow2.f32 %v934_v57 }
 0x234   :  { %v975_v33 = vpop.eup %974 }
 0x235   :  { %v741_v58 = vadd.f32 1.0, %v975_v33 }
 0x237   :  { %976 = vrcp.f32 %v741_v58  ;;  %v753_v61 = vand.u32 2147483648, %v741_v58  ;;  %v751_v63 = vand.u32 2147483647, %v741_v58  ;;  %vm747_vm3 = vweird.f32 %v741_v58 }
 0x239   :  { %v754_v1 = vor.u32 1.1754944e-38, %v753_v61  ;;  %vm752_vm5 = vcmp.eq.f32.partialorder %v751_v63, 8.507059e+37 }
 0x23d   :  { %v977_v37 = vpop.eup %976 }
 0x23e   :  { %v743_v59 = vmul.f32 %v977_v37, %v741_v58  ;;  %vm748_vm2 = vweird.f32 %v977_v37 }
 0x23f   :  { %vm749_vm4 = vmor %vm747_vm3, %vm748_vm2 }
 0x240   :  { %v744_v60 = vsub.f32 1.0, %v743_v59 }
 0x242   :  { %v745_v62 = vmul.f32 %v977_v37, %v744_v60 }
 0x244   :  { %v746_v0 = vadd.f32 %v977_v37, %v745_v62 }
 0x246   :  { %v750_v2 = vsel %vm749_vm4, %v977_v37, %v746_v0 }
 0x247   :  { %v755_v3 = vsel %vm752_vm5, %v754_v1, %v750_v2 }
 0x248   :  { %757 = vst [vmem:[#allocation3] sm:$0x1] %v755_v3 }
 0x249   :  { %768 = dma.vmem_to_hbm [thread:$0]  %s764_s5, 16, %s766_s13, [#allocation4]  }
 0x24a   :  { %1002 = dma.done.wait [#allocation4], 16  }
 0x24b   :  { %1003 = vsyncadd [#allocation4], 4294967280 }
 0x24c   :  { %773 = vsyncpa [#allocation4], 1 }

</bundles_post_ra>
